<compile_context>
chip_gen: v7x
topology: tpu7x:2x2x1
jax: 0.10.0
libtpu: 0.0.40
codegen_flags: <defaults>
</compile_context>

<pallas_src>
import functools

import jax
import jax.numpy as jnp
from jax.experimental import pallas as pl
from jax.experimental.pallas import tpu as pltpu


def _nw_kernel(w_ref, q_ref, k_ref, v_ref, o_ref):
    # w_ref: SMEM (1,)           scalar bandwidth parameter
    # q_ref: VMEM (tile_n, 1)    queries as a column (broadcast over M lanes)
    # k_ref: VMEM (tile_n, M)    keys, natural layout (no wrapper transpose)
    # v_ref: VMEM (tile_n, M)    values, natural layout
    # o_ref: VMEM (tile_n, 1)    output column
    w = w_ref[0]
    c = -0.5 * (w * w)                        # fold *w and -(.)^2/2 into one scalar
    diff = q_ref[...] - k_ref[...]            # (tile_n, M), lane-broadcast of q
    s = c * (diff * diff)                     # scores, all <= 0

    # Numerically stable softmax over the key axis (axis=1, lanes), with the
    # normalization folded into the final (tile_n, 1) column reduction.
    m = jnp.max(s, axis=1, keepdims=True)     # (tile_n, 1)
    p = jnp.exp(s - m)                        # (tile_n, M)
    num = jnp.sum(p * v_ref[...], axis=1, keepdims=True)   # (tile_n, 1)
    den = jnp.sum(p, axis=1, keepdims=True)                 # (tile_n, 1)

    # Exact reciprocal on a (tile_n, 1) column: negligible cost, bit-safe
    # against the 1e-5 tolerance used in the test below.
    o_ref[...] = num * pl.reciprocal(den, approx=False)


@functools.partial(jax.jit, static_argnames=("tile_n",))
def nw_kernel_regression(queries, keys, values, w, *, tile_n=None):
    """queries: (N,), keys/values: (N, M), w: (1,) -> (N,)"""
    N, M = keys.shape
    assert queries.shape == (N,)
    assert values.shape == (N, M)

    # Cheap layout plumbing only (fused under jit): queries as a column.
    q_col = queries.reshape(N, 1).astype(jnp.float32)
    k = keys.astype(jnp.float32)
    v = values.astype(jnp.float32)
    w = w.astype(jnp.float32)

    if tile_n is None:
        # Production guidance (perf review): ~8192-16384 on v7x (3.2 TB/s),
        # 4096-8192 on v6e, 2048-4096 on v5e.  Footprint per step is
        # ~2*(2M+2)*tile_n*4 B double-buffered, comfortably under scoped VMEM
        # at M=50 for all of these.  Toy sizes take the single-block path.
        tile_n = min(N, 8192)

    if tile_n >= N:
        # Single block: no grid -> no double-buffering / pipeline prologue
        # for a 1-step grid.  Whole arrays resident in VMEM for one call.
        out = pl.pallas_call(
            _nw_kernel,
            out_shape=jax.ShapeDtypeStruct((N, 1), jnp.float32),
            in_specs=[
                pl.BlockSpec(memory_space=pltpu.MemorySpace.SMEM),   # w (1,)
                pl.BlockSpec(memory_space=pltpu.MemorySpace.VMEM),   # q (N, 1)
                pl.BlockSpec(memory_space=pltpu.MemorySpace.VMEM),   # k (N, M)
                pl.BlockSpec(memory_space=pltpu.MemorySpace.VMEM),   # v (N, M)
            ],
            out_specs=pl.BlockSpec(memory_space=pltpu.MemorySpace.VMEM),
        )(w, q_col, k, v)
    else:
        # Multi-step parallel grid along N (both v7x TensorCores share it).
        assert tile_n % 8 == 0 and N % tile_n == 0, (
            "when tiling along N, tile_n must be a multiple of 8 dividing N")
        grid = (N // tile_n,)
        out = pl.pallas_call(
            _nw_kernel,
            out_shape=jax.ShapeDtypeStruct((N, 1), jnp.float32),
            grid=grid,
            in_specs=[
                pl.BlockSpec(memory_space=pltpu.MemorySpace.SMEM),   # w (1,)
                pl.BlockSpec((tile_n, 1), lambda i: (i, 0)),         # queries
                pl.BlockSpec((tile_n, M), lambda i: (i, 0)),         # keys
                pl.BlockSpec((tile_n, M), lambda i: (i, 0)),         # values
            ],
            out_specs=pl.BlockSpec((tile_n, 1), lambda i: (i, 0)),
            compiler_params=pltpu.CompilerParams(
                dimension_semantics=("parallel",)),
        )(w, q_col, k, v)

    return out.reshape(-1)


def nw_reference(queries, keys, values, w):
    """Pure-JAX reference mirroring the PyTorch forward exactly."""
    N, M = keys.shape
    q = jnp.repeat(queries, M).reshape(-1, M)
    s = -((q - keys) * w[0]) ** 2 / 2
    attn = jax.nn.softmax(s, axis=1)
    return jnp.einsum("nm,nm->n", attn, values)


if __name__ == "__main__":
    key = jax.random.PRNGKey(0)
    k_w, k_q, k_k, k_v = jax.random.split(key, 4)

    # Deterministic parameter init, matching nn.Parameter(torch.rand((1,))).
    w = jax.random.uniform(k_w, (1,), dtype=jnp.float32)

    # --- Toy size (matches the module's intended use): single-block path ---
    N, M = 64, 50
    queries = jax.random.uniform(k_q, (N,), dtype=jnp.float32) * 5.0
    keys = jax.random.uniform(k_k, (N, M), dtype=jnp.float32) * 5.0
    values = jax.random.normal(k_v, (N, M), dtype=jnp.float32)

    out = nw_kernel_regression(queries, keys, values, w)
    out = jax.block_until_ready(out)
    ref = nw_reference(queries, keys, values, w)
    assert out.shape == (N,)
    assert jnp.allclose(out, ref, atol=1e-5, rtol=1e-5), (
        f"mismatch: max err {jnp.max(jnp.abs(out - ref))}")

    # --- Tiled path sanity check (exercises the production grid code path) ---
    N2 = 1024
    queries2 = jax.random.uniform(k_q, (N2,), dtype=jnp.float32) * 5.0
    keys2 = jax.random.uniform(k_k, (N2, M), dtype=jnp.float32) * 5.0
    values2 = jax.random.normal(k_v, (N2, M), dtype=jnp.float32)

    out2 = nw_kernel_regression(queries2, keys2, values2, w, tile_n=256)
    out2 = jax.block_until_ready(out2)
    ref2 = nw_reference(queries2, keys2, values2, w)
    assert out2.shape == (N2,)
    assert jnp.allclose(out2, ref2, atol=1e-5, rtol=1e-5), (
        f"tiled mismatch: max err {jnp.max(jnp.abs(out2 - ref2))}")

    print("KERNEL_OK")
</pallas_src>

<mosaic_0001>
module attributes {stable_mosaic.version = 11 : i64} {
  func.func @_nw_kernel(%arg0: memref<1xf32, #tpu.memory_space<smem>>, %arg1: memref<64x1xf32, #tpu.memory_space<vmem>>, %arg2: memref<64x50xf32, #tpu.memory_space<vmem>>, %arg3: memref<64x50xf32, #tpu.memory_space<vmem>>, %arg4: memref<64x1xf32, #tpu.memory_space<vmem>>) attributes {dimension_semantics = [], scalar_prefetch = 0 : i64, scratch_operands = 0 : i64, tpu.core_type = #tpu.core_type<tc>} {
    %c0 = arith.constant 0 : index
    %0 = memref.load %arg0[%c0] : memref<1xf32, #tpu.memory_space<smem>>
    %1 = arith.mulf %0, %0 : f32
    %cst = arith.constant -5.000000e-01 : f32
    %2 = arith.mulf %cst, %1 : f32
    %c0_0 = arith.constant 0 : index
    %c0_1 = arith.constant 0 : index
    %3 = vector.load %arg1[%c0_0, %c0_1] : memref<64x1xf32, #tpu.memory_space<vmem>>, vector<64x1xf32>
    %c0_2 = arith.constant 0 : index
    %c0_3 = arith.constant 0 : index
    %4 = vector.load %arg2[%c0_2, %c0_3] : memref<64x50xf32, #tpu.memory_space<vmem>>, vector<64x50xf32>
    %5 = vector.broadcast %3 : vector<64x1xf32> to vector<64x50xf32>
    %6 = arith.subf %5, %4 : vector<64x50xf32>
    %7 = arith.mulf %6, %6 : vector<64x50xf32>
    %8 = vector.broadcast %2 : f32 to vector<64x50xf32>
    %9 = arith.mulf %8, %7 : vector<64x50xf32>
    %cst_4 = arith.constant dense<0xFF800000> : vector<64xf32>
    %10 = vector.multi_reduction <maximumf>, %9, %cst_4 [1] : vector<64x50xf32> to vector<64xf32>
    %11 = vector.shape_cast %10 : vector<64xf32> to vector<64x1xf32>
    %12 = vector.broadcast %11 : vector<64x1xf32> to vector<64x50xf32>
    %13 = arith.subf %9, %12 : vector<64x50xf32>
    %14 = math.exp %13 : vector<64x50xf32>
    %c0_5 = arith.constant 0 : index
    %c0_6 = arith.constant 0 : index
    %15 = vector.load %arg3[%c0_5, %c0_6] : memref<64x50xf32, #tpu.memory_space<vmem>>, vector<64x50xf32>
    %16 = arith.mulf %14, %15 : vector<64x50xf32>
    %cst_7 = arith.constant dense<0.000000e+00> : vector<64xf32>
    %17 = vector.multi_reduction <add>, %16, %cst_7 [1] : vector<64x50xf32> to vector<64xf32>
    %18 = vector.shape_cast %17 : vector<64xf32> to vector<64x1xf32>
    %cst_8 = arith.constant dense<0.000000e+00> : vector<64xf32>
    %19 = vector.multi_reduction <add>, %14, %cst_8 [1] : vector<64x50xf32> to vector<64xf32>
    %20 = vector.shape_cast %19 : vector<64xf32> to vector<64x1xf32>
    %21 = tpu.reciprocal %20 : vector<64x1xf32> -> vector<64x1xf32>
    %22 = arith.mulf %18, %21 : vector<64x1xf32>
    %c0_9 = arith.constant 0 : index
    %c0_10 = arith.constant 0 : index
    %23 = vector.load %arg4[%c0_9, %c0_10] : memref<64x1xf32, #tpu.memory_space<vmem>>, vector<64x1xf32>
    tpu.vector_store %arg4[%c0_9, %c0_10], %22 {strides = array<i32>} : memref<64x1xf32, #tpu.memory_space<vmem>>, vector<64x1xf32>,
    return
  }
}

</mosaic_0001>

<bundles_post_ra>
// kernel: nw_kernel_regression.1
= control target key start
LH: loop header
LB: loop body
LE: loop exit
PB: predicated region body
PF: predicated region fallthrough
CT: control target
= control target key end

     0   :  { %v279_v0 = vmov 0   ;;  %vm102_vm0 = vcmask 408576   ;;  %vm231_vm1 = vcmask 7168   ;;  %s437_s1 = inlined_call_operand.vmem [shape: f32[64,1], index: 1, kind: input, shape index: {}]   ;;  %s438_s0 = inlined_call_operand.<no memory space> [shape: f32[1], index: 0, kind: input, shape index: {}]   ;;  %s439_s2 = inlined_call_operand.vmem [shape: f32[64,50], index: 2, kind: input, shape index: {}]   ;;  %s440_s3 = inlined_call_operand.vmem [shape: f32[64,50], index: 3, kind: input, shape index: {}]   ;;  %s441_s4 = inlined_call_operand.vmem [shape: f32[64,1], index: 4, kind: output, shape index: {}]  }
   0x1   :  { %246 = vset.pattern.permute.xlu1 %v279_v0  ;;  %245 = vset.pattern.permute.xlu0 %v279_v0  ;;  %v23_v1 = vld [vmem:[%s437_s1 + $0x10] sm:$0xff]  ;;  %v21_v2 = vld [vmem:[%s437_s1] sm:$0xff]  ;;  %v24_v3 = vld [vmem:[%s437_s1 + $0x18] sm:$0xff]  ;;  %s19_s7 = smul.f32 %s438_s0, %s438_s0 }
   0x2   :  { %49 = vperm.xlu1 %246, %v23_v1   ;;  %39 = vperm.xlu0 %245, %v21_v2   ;;  %v22_v4 = vld [vmem:[%s437_s1 + $0x8] sm:$0xff]  ;;  %v25_v6 = vld [vmem:[%s437_s1 + $0x20] sm:$0xff]  ;;  %v28_v7 = vld [vmem:[%s437_s1 + $0x38] sm:$0xff] }
   0x3   :  { %v26_v5 = vld [vmem:[%s437_s1 + $0x28] sm:$0xff]  ;;  %v27_v8 = vld [vmem:[%s437_s1 + $0x30] sm:$0xff]  ;;  %v29_v10 = vld [vmem:[%s439_s2] sm:$0xff]  ;;  %s20_s12 = smul.f32 -0.5, %s19_s7 }
   0x4   :  { %v31_v9 = vld [vmem:[%s439_s2 + $0x10] sm:$0xff]  ;;  %v32_v15 = vld [vmem:[%s439_s2 + $0x18] sm:$0xff]  ;;  %v30_v16 = vld [vmem:[%s439_s2 + $0x8] sm:$0xff] }
   0x5   :  { %v93_v17 = vstv %s20_s12  ;;  %v34_v26 = vld [vmem:[%s439_s2 + $0x28] sm:$0xff]  ;;  %v33_v27 = vld [vmem:[%s439_s2 + $0x20] sm:$0xff]  ;;  %v36_v37 = vld [vmem:[%s439_s2 + $0x38] sm:$0xff] }
   0x6   :  { %54 = vperm.xlu1 %246, %v24_v3   ;;  %44 = vperm.xlu0 %245, %v22_v4   ;;  %v35_v38 = vld [vmem:[%s439_s2 + $0x30] sm:$0xff] }
   0xa   :  { %64 = vperm.xlu1 %246, %v26_v5   ;;  %59 = vperm.xlu0 %245, %v25_v6  }
   0xe   :  { %74 = vperm.xlu1 %246, %v28_v7   ;;  %69 = vperm.xlu0 %245, %v27_v8  }
  0x81   :  { %v50_v11 = vpop.permute.xlu1 %49  ;;  %v40_v12 = vpop.permute.xlu0 %39 }
  0x82   :  { %v79_v13 = vsub.f32 %v50_v11, %v31_v9  ;;  %v77_v14 = vsub.f32 %v40_v12, %v29_v10 }
  0x84   :  { %v87_v18 = vmul.f32 %v79_v13, %v79_v13  ;;  %v85_v19 = vmul.f32 %v77_v14, %v77_v14 }
  0x85   :  { %v55_v20 = vpop.permute.xlu1 %54  ;;  %v45_v21 = vpop.permute.xlu0 %44 }
  0x86   :  { %v80_v22 = vsub.f32 %v55_v20, %v32_v15  ;;  %v78_v23 = vsub.f32 %v45_v21, %v30_v16  ;;  %v94_v24 = vmul.f32 %v93_v17, %v85_v19  ;;  %v96_v25 = vmul.f32 %v93_v17, %v87_v18 }
  0x88   :  { %v88_v28 = vmul.f32 %v80_v22, %v80_v22  ;;  %v86_v29 = vmul.f32 %v78_v23, %v78_v23  ;;  %v103_v30 = vsel %vm102_vm0, %v94_v24, -inf  ;;  %v109_v36 = vsel %vm102_vm0, %v96_v25, -inf }
  0x89   :  { %v65_v31 = vpop.permute.xlu1 %64  ;;  %v60_v32 = vpop.permute.xlu0 %59  ;;  %104 = vmax.xlane.f32.xlu0 %v103_v30 }
  0x8a   :  { %v82_v33 = vsub.f32 %v65_v31, %v34_v26  ;;  %v81_v34 = vsub.f32 %v60_v32, %v33_v27  ;;  %v95_v35 = vmul.f32 %v93_v17, %v86_v29  ;;  %v97_v39 = vmul.f32 %v93_v17, %v88_v28  ;;  %v151_v28 = vld [vmem:[%s440_s3] sm:$0xff] }
  0x8c   :  { %v90_v40 = vmul.f32 %v82_v33, %v82_v33  ;;  %v89_v41 = vmul.f32 %v81_v34, %v81_v34  ;;  %v106_v42 = vsel %vm102_vm0, %v95_v35, -inf  ;;  %v112_v48 = vsel %vm102_vm0, %v97_v39, -inf  ;;  %v153_v34 = vld [vmem:[%s440_s3 + $0x10] sm:$0xff] }
  0x8d   :  { %v75_v43 = vpop.permute.xlu1 %74  ;;  %v70_v44 = vpop.permute.xlu0 %69  ;;  %107 = vmax.xlane.f32.xlu1 %v106_v42  ;;  %110 = vmax.xlane.f32.xlu0 %v109_v36  ;;  %v154_v42 = vld [vmem:[%s440_s3 + $0x18] sm:$0xff] }
  0x8e   :  { %v84_v45 = vsub.f32 %v75_v43, %v36_v37  ;;  %v83_v46 = vsub.f32 %v70_v44, %v35_v38  ;;  %v98_v47 = vmul.f32 %v93_v17, %v89_v41  ;;  %v99_v52 = vmul.f32 %v93_v17, %v90_v40  ;;  %v155_v41 = vld [vmem:[%s440_s3 + $0x20] sm:$0xff] }
  0x90   :  { %v92_v49 = vmul.f32 %v84_v45, %v84_v45  ;;  %v91_v50 = vmul.f32 %v83_v46, %v83_v46  ;;  %v115_v51 = vsel %vm102_vm0, %v98_v47, -inf  ;;  %v118_v55 = vsel %vm102_vm0, %v99_v52, -inf }
  0x91   :  { %116 = vmax.xlane.f32.xlu1 %v115_v51  ;;  %113 = vmax.xlane.f32.xlu0 %v112_v48  ;;  %v156_v48 = vld [vmem:[%s440_s3 + $0x28] sm:$0xff] }
  0x92   :  { %v100_v53 = vmul.f32 %v93_v17, %v91_v50  ;;  %v101_v56 = vmul.f32 %v93_v17, %v92_v49 }
  0x94   :  { %v121_v54 = vsel %vm102_vm0, %v100_v53, -inf  ;;  %v124_v57 = vsel %vm102_vm0, %v101_v56, -inf }
  0x95   :  { %122 = vmax.xlane.f32.xlu1 %v121_v54  ;;  %119 = vmax.xlane.f32.xlu0 %v118_v55 }
  0x99   :  { %125 = vmax.xlane.f32.xlu0 %v124_v57 }
 0x116   :  { %v105_v58 = vpop.xlane.xlu0 %104 }
 0x117   :  { %v127_v59 = vsub.f32 %v94_v24, %v105_v58 }
 0x119   :  { %v135_v60 = vmul.f32 1.442695, %v127_v59 }
 0x11a   :  { %v108_v61 = vpop.xlane.xlu1 %107  ;;  %v111_v62 = vpop.xlane.xlu0 %110 }
 0x11b   :  { %247 = vpow2.f32 %v135_v60  ;;  %v128_v63 = vsub.f32 %v95_v35, %v108_v61  ;;  %v129_v0 = vsub.f32 %v96_v25, %v111_v62  ;;  %v152_v35 = vld [vmem:[%s440_s3 + $0x8] sm:$0xff] }
 0x11d   :  { %v137_v1 = vmul.f32 1.442695, %v128_v63  ;;  %v139_v2 = vmul.f32 1.442695, %v129_v0 }
 0x11e   :  { %v117_v3 = vpop.xlane.xlu1 %116  ;;  %v114_v4 = vpop.xlane.xlu0 %113 }
 0x11f   :  { %249 = vpow2.f32 %v137_v1  ;;  %v131_v5 = vsub.f32 %v98_v47, %v117_v3  ;;  %v130_v6 = vsub.f32 %v97_v39, %v114_v4  ;;  %v157_v47 = vld [vmem:[%s440_s3 + $0x30] sm:$0xff] }
 0x120   :  { %251 = vpow2.f32 %v139_v2 }
 0x121   :  { %v143_v7 = vmul.f32 1.442695, %v131_v5  ;;  %v141_v8 = vmul.f32 1.442695, %v130_v6 }
 0x122   :  { %v123_v9 = vpop.xlane.xlu1 %122  ;;  %v120_v10 = vpop.xlane.xlu0 %119 }
 0x123   :  { %253 = vpow2.f32 %v143_v7  ;;  %v133_v11 = vsub.f32 %v100_v53, %v123_v9  ;;  %v132_v12 = vsub.f32 %v99_v52, %v120_v10  ;;  %v158_v53 = vld [vmem:[%s440_s3 + $0x38] sm:$0xff] }
 0x124   :  { %255 = vpow2.f32 %v141_v8 }
 0x125   :  { %v248_v13 = vpop.eup %247  ;;  %v147_v14 = vmul.f32 1.442695, %v133_v11  ;;  %v145_v15 = vmul.f32 1.442695, %v132_v12 }
 0x126   :  { %v126_v16 = vpop.xlane.xlu0 %125  ;;  %v191_v17 = vsel %vm102_vm0, %v248_v13, 0.0  ;;  %v159_v33 = vmul.f32 %v248_v13, %v151_v28 }
 0x127   :  { %257 = vpow2.f32 %v147_v14  ;;  %v134_v18 = vsub.f32 %v101_v56, %v126_v16  ;;  %192 = vadd.xlane.f32.xlu1 %v191_v17 }
 0x128   :  { %259 = vpow2.f32 %v145_v15  ;;  %v167_v38 = vsel %vm102_vm0, %v159_v33, 0.0 }
 0x129   :  { %v250_v19 = vpop.eup %249  ;;  %v149_v20 = vmul.f32 1.442695, %v134_v18 }
 0x12a   :  { %v252_v21 = vpop.eup %251  ;;  %v194_v22 = vsel %vm102_vm0, %v250_v19, 0.0  ;;  %v160_v40 = vmul.f32 %v250_v19, %v152_v35 }
 0x12b   :  { %261 = vpow2.f32 %v149_v20  ;;  %195 = vadd.xlane.f32.xlu0 %v194_v22  ;;  %v197_v23 = vsel %vm102_vm0, %v252_v21, 0.0  ;;  %v161_v39 = vmul.f32 %v252_v21, %v153_v34 }
 0x12c   :  { %198 = vadd.xlane.f32.xlu1 %v197_v23  ;;  %v170_v44 = vsel %vm102_vm0, %v160_v40, 0.0 }
 0x12d   :  { %v254_v24 = vpop.eup %253  ;;  %v173_v43 = vsel %vm102_vm0, %v161_v39, 0.0 }
 0x12e   :  { %v256_v25 = vpop.eup %255  ;;  %v203_v26 = vsel %vm102_vm0, %v254_v24, 0.0  ;;  %v163_v45 = vmul.f32 %v254_v24, %v155_v41 }
 0x12f   :  { %v200_v27 = vsel %vm102_vm0, %v256_v25, 0.0  ;;  %v162_v46 = vmul.f32 %v256_v25, %v154_v42 }
 0x130   :  { %204 = vadd.xlane.f32.xlu1 %v203_v26  ;;  %201 = vadd.xlane.f32.xlu0 %v200_v27  ;;  %v179_v49 = vsel %vm102_vm0, %v163_v45, 0.0 }
 0x131   :  { %v258_v29 = vpop.eup %257  ;;  %v176_v50 = vsel %vm102_vm0, %v162_v46, 0.0 }
 0x132   :  { %v260_v30 = vpop.eup %259  ;;  %v209_v31 = vsel %vm102_vm0, %v258_v29, 0.0  ;;  %v165_v51 = vmul.f32 %v258_v29, %v157_v47 }
 0x133   :  { %v206_v32 = vsel %vm102_vm0, %v260_v30, 0.0  ;;  %v164_v52 = vmul.f32 %v260_v30, %v156_v48 }
 0x134   :  { %210 = vadd.xlane.f32.xlu1 %v209_v31  ;;  %207 = vadd.xlane.f32.xlu0 %v206_v32  ;;  %v185_v54 = vsel %vm102_vm0, %v165_v51, 0.0 }
 0x135   :  { %v262_v36 = vpop.eup %261  ;;  %v182_v55 = vsel %vm102_vm0, %v164_v52, 0.0 }
 0x136   :  { %v212_v37 = vsel %vm102_vm0, %v262_v36, 0.0  ;;  %v166_v56 = vmul.f32 %v262_v36, %v158_v53 }
 0x138   :  { %168 = vadd.xlane.f32.xlu1 %v167_v38  ;;  %213 = vadd.xlane.f32.xlu0 %v212_v37  ;;  %v188_v57 = vsel %vm102_vm0, %v166_v56, 0.0 }
 0x13c   :  { %174 = vadd.xlane.f32.xlu1 %v173_v43  ;;  %171 = vadd.xlane.f32.xlu0 %v170_v44 }
 0x140   :  { %180 = vadd.xlane.f32.xlu1 %v179_v49  ;;  %177 = vadd.xlane.f32.xlu0 %v176_v50 }
 0x144   :  { %186 = vadd.xlane.f32.xlu1 %v185_v54  ;;  %183 = vadd.xlane.f32.xlu0 %v182_v55 }
 0x148   :  { %189 = vadd.xlane.f32.xlu0 %v188_v57 }
 0x1b4   :  { %v193_v58 = vpop.xlane.xlu1 %192 }
 0x1b5   :  { %263 = vrcp.f32 %v193_v58 }
 0x1b8   :  { %v196_v59 = vpop.xlane.xlu0 %195 }
 0x1b9   :  { %v199_v60 = vpop.xlane.xlu1 %198  ;;  %265 = vrcp.f32 %v196_v59 }
 0x1ba   :  { %267 = vrcp.f32 %v199_v60 }
 0x1bd   :  { %v205_v61 = vpop.xlane.xlu1 %204  ;;  %v202_v62 = vpop.xlane.xlu0 %201 }
 0x1be   :  { %269 = vrcp.f32 %v205_v61 }
 0x1bf   :  { %271 = vrcp.f32 %v202_v62  ;;  %v264_v1 = vpop.eup %263 }
 0x1c1   :  { %v211_v63 = vpop.xlane.xlu1 %210  ;;  %v208_v0 = vpop.xlane.xlu0 %207 }
 0x1c2   :  { %273 = vrcp.f32 %v211_v63 }
 0x1c3   :  { %275 = vrcp.f32 %v208_v0  ;;  %v266_v5 = vpop.eup %265 }
 0x1c4   :  { %v268_v6 = vpop.eup %267 }
 0x1c5   :  { %v169_v2 = vpop.xlane.xlu1 %168  ;;  %v214_v3 = vpop.xlane.xlu0 %213 }
 0x1c6   :  { %v223_v4 = vmul.f32 %v264_v1, %v169_v2  ;;  %277 = vrcp.f32 %v214_v3 }
 0x1c8   :  { %232 = vst.msk [vmem:[%s441_s4] sm:$0xff] %vm231_vm1, %v223_v4  ;;  %v270_v11 = vpop.eup %269 }
 0x1c9   :  { %v175_v7 = vpop.xlane.xlu1 %174  ;;  %v172_v8 = vpop.xlane.xlu0 %171 }
 0x1ca   :  { %v225_v9 = vmul.f32 %v268_v6, %v175_v7  ;;  %v224_v10 = vmul.f32 %v266_v5, %v172_v8  ;;  %v272_v12 = vpop.eup %271 }
 0x1cc   :  { %234 = vst.msk [vmem:[%s441_s4 + $0x10] sm:$0xff] %vm231_vm1, %v225_v9  ;;  %233 = vst.msk [vmem:[%s441_s4 + $0x8] sm:$0xff] %vm231_vm1, %v224_v10  ;;  %v274_v17 = vpop.eup %273 }
 0x1cd   :  { %v181_v13 = vpop.xlane.xlu1 %180  ;;  %v178_v14 = vpop.xlane.xlu0 %177 }
 0x1ce   :  { %v227_v15 = vmul.f32 %v270_v11, %v181_v13  ;;  %v226_v16 = vmul.f32 %v272_v12, %v178_v14  ;;  %v276_v18 = vpop.eup %275 }
 0x1d0   :  { %236 = vst.msk [vmem:[%s441_s4 + $0x20] sm:$0xff] %vm231_vm1, %v227_v15  ;;  %235 = vst.msk [vmem:[%s441_s4 + $0x18] sm:$0xff] %vm231_vm1, %v226_v16  ;;  %v278_v23 = vpop.eup %277 }
 0x1d1   :  { %v187_v19 = vpop.xlane.xlu1 %186  ;;  %v184_v20 = vpop.xlane.xlu0 %183 }
 0x1d2   :  { %v229_v21 = vmul.f32 %v274_v17, %v187_v19  ;;  %v228_v22 = vmul.f32 %v276_v18, %v184_v20 }
 0x1d4   :  { %238 = vst.msk [vmem:[%s441_s4 + $0x30] sm:$0xff] %vm231_vm1, %v229_v21  ;;  %237 = vst.msk [vmem:[%s441_s4 + $0x28] sm:$0xff] %vm231_vm1, %v228_v22 }
 0x1d5   :  { %v190_v24 = vpop.xlane.xlu0 %189 }
 0x1d6   :  { %v230_v25 = vmul.f32 %v278_v23, %v190_v24 }
 0x1d8   :  { %239 = vst.msk [vmem:[%s441_s4 + $0x38] sm:$0xff] %vm231_vm1, %v230_v25 }

</bundles_post_ra>
